<compile_context>
chip_gen: v6e
topology: v6e:2x2x1
jax: 0.10.0
libtpu: 0.0.40
codegen_flags: <defaults>
</compile_context>

<pallas_src>
import jax
import jax.numpy as jnp
from jax.experimental import pallas as pl
from jax.experimental.pallas import tpu as pltpu


def aff_kernel(x_ref, alpha_ref, beta_ref, o_ref):
    # Pure VPU elementwise work; kernel is HBM-bound, compute is free filler.
    a = alpha_ref[...]          # (1, D) -> broadcast over rows
    b = beta_ref[...]           # (1, D)
    o_ref[...] = (x_ref[...] * a + b).astype(o_ref.dtype)


def _round_up(v, m):
    return ((v + m - 1) // m) * m


def aff(x, alpha, beta, *,
        target_block_bytes=6 * 1024 * 1024,   # ~4-8 MiB per block amortizes step overhead
        max_block_bytes=10 * 1024 * 1024):    # per-block ceiling safe for v7x (64 MiB VMEM)
    B, N, D = x.shape
    rows = B * N

    # Lane-dense 2D view: (B*N, D). D (channels) sits on the 128-lane axis.
    x2 = x.reshape(rows, D)
    a2 = alpha.reshape(1, D)
    b2 = beta.reshape(1, D)

    itemsize = jnp.dtype(x.dtype).itemsize
    param_itemsize = max(jnp.dtype(alpha.dtype).itemsize, jnp.dtype(beta.dtype).itemsize)
    # Sublane packing factor: 8 rows/vreg for 32-bit, 16 for bf16, 32 for int8/fp8.
    pack = 8 * max(1, 4 // itemsize)
    row_bytes = D * itemsize

    # --- Row-tile sizing: target bytes per block, aligned to packing. ---
    tm = min(target_block_bytes, max_block_bytes) // max(row_bytes, 1)
    tm = max(pack, (tm // pack) * pack)

    if tm >= rows:
        # Everything fits in one block. Split into two aligned halves when
        # possible so v7x's two TensorCores both get work.
        if rows >= 2 * pack:
            tm = _round_up(pl.cdiv(rows, 2), pack)
        else:
            tm = rows  # full-extent block: satisfies the (8,128) rule as full dim
    else:
        # Balance tile sizes across the grid so the tail tile is not tiny
        # (avoids one core on v7x getting a lone ragged step).
        ntiles = pl.cdiv(rows, tm)
        tm = _round_up(pl.cdiv(rows, ntiles), pack)

    grid = (pl.cdiv(rows, tm),)

    # --- VMEM budget actually handed to the compiler. ---
    # 2x double-buffered input block + 2x output block + resident alpha/beta
    # + slack, floored at the universally-safe 16 MiB, capped at 48 MiB (v7x).
    block_bytes = tm * row_bytes
    param_bytes = 2 * 2 * D * param_itemsize
    vmem_limit = 4 * block_bytes + param_bytes + (4 * 1024 * 1024)
    vmem_limit = int(min(max(vmem_limit, 16 * 1024 * 1024), 48 * 1024 * 1024))

    cost = pl.CostEstimate(
        flops=2 * rows * D,
        transcendentals=0,
        bytes_accessed=2 * rows * D * itemsize + 2 * D * param_itemsize,
    )

    out2 = pl.pallas_call(
        aff_kernel,
        out_shape=jax.ShapeDtypeStruct((rows, D), x.dtype),
        grid_spec=pl.GridSpec(
            grid=grid,
            in_specs=[
                pl.BlockSpec((tm, D), lambda i: (i, 0)),   # x rows, pipelined
                pl.BlockSpec((1, D), lambda i: (0, 0)),    # alpha, resident constant block
                pl.BlockSpec((1, D), lambda i: (0, 0)),    # beta, resident constant block
            ],
            out_specs=pl.BlockSpec((tm, D), lambda i: (i, 0)),
        ),
        compiler_params=pltpu.CompilerParams(
            dimension_semantics=("parallel",),
            vmem_limit_bytes=vmem_limit,
        ),
        cost_estimate=cost,
    )(x2, a2, b2)

    return out2.reshape(B, N, D)


if __name__ == "__main__":
    key = jax.random.PRNGKey(0)

    # Small shape matching the module's [batch, seq, dim] layout.
    B, N, D = 2, 8, 128
    x = jax.random.normal(key, (B, N, D), dtype=jnp.float32)
    alpha = jnp.ones((1, 1, D), dtype=jnp.float32)   # nn.Parameter(torch.ones([1,1,dim]))
    beta = jnp.zeros((1, 1, D), dtype=jnp.float32)   # nn.Parameter(torch.zeros([1,1,dim]))

    out = jax.block_until_ready(aff(x, alpha, beta))
    ref = x * alpha + beta
    assert out.shape == (B, N, D)
    assert jnp.allclose(out, ref, atol=1e-6), "mismatch vs reference (small shape)"

    # Second check: exercises a multi-step, balanced row grid with a partial tile.
    B2, N2 = 3, 345  # rows = 1035
    k1, k2, k3 = jax.random.split(jax.random.PRNGKey(1), 3)
    x2 = jax.random.normal(k1, (B2, N2, D), dtype=jnp.float32)
    alpha2 = jax.random.normal(k2, (1, 1, D), dtype=jnp.float32)
    beta2 = jax.random.normal(k3, (1, 1, D), dtype=jnp.float32)

    out2 = jax.block_until_ready(aff(x2, alpha2, beta2))
    ref2 = x2 * alpha2 + beta2
    assert jnp.allclose(out2, ref2, atol=1e-5), "mismatch vs reference (tiled shape)"

    # Third check: mixed dtypes (bf16 activations, f32 params) exercises the
    # explicit astype on the store and the bf16 sublane-packing path.
    B3, N3, D3 = 2, 9, 256
    k4, k5, k6 = jax.random.split(jax.random.PRNGKey(2), 3)
    x3 = jax.random.normal(k4, (B3, N3, D3), dtype=jnp.bfloat16)
    alpha3 = jax.random.normal(k5, (1, 1, D3), dtype=jnp.float32)
    beta3 = jax.random.normal(k6, (1, 1, D3), dtype=jnp.float32)

    out3 = jax.block_until_ready(aff(x3, alpha3, beta3))
    ref3 = (x3 * alpha3 + beta3).astype(jnp.bfloat16)
    assert out3.dtype == jnp.bfloat16
    assert jnp.allclose(out3.astype(jnp.float32), ref3.astype(jnp.float32),
                        atol=2e-2, rtol=2e-2), "mismatch vs reference (bf16 mixed dtype)"

    print("KERNEL_OK")
</pallas_src>

<mosaic_0001>
module attributes {stable_mosaic.version = 11 : i64} {
  func.func @aff_kernel(%arg0: i32, %arg1: memref<8x128xf32, #tpu.memory_space<vmem>>, %arg2: memref<1x128xf32, #tpu.memory_space<vmem>>, %arg3: memref<1x128xf32, #tpu.memory_space<vmem>>, %arg4: memref<8x128xf32, #tpu.memory_space<vmem>>) attributes {dimension_semantics = [#tpu.dimension_semantics<parallel>], iteration_bounds = array<i64: 2>, scalar_prefetch = 0 : i64, scratch_operands = 0 : i64, tpu.core_type = #tpu.core_type<tc>, window_params = [{transform_indices = @transform_0, window_bounds = array<i64: 8, 128>}, {pipeline_mode = #tpu.pipeline_mode<synchronous>, transform_indices = @transform_1, window_bounds = array<i64: 1, 128>}, {pipeline_mode = #tpu.pipeline_mode<synchronous>, transform_indices = @transform_2, window_bounds = array<i64: 1, 128>}, {transform_indices = @transform_3, window_bounds = array<i64: 8, 128>}]} {
    %c0 = arith.constant 0 : index
    %c0_0 = arith.constant 0 : index
    %0 = vector.load %arg2[%c0, %c0_0] : memref<1x128xf32, #tpu.memory_space<vmem>>, vector<1x128xf32>
    %c0_1 = arith.constant 0 : index
    %c0_2 = arith.constant 0 : index
    %1 = vector.load %arg3[%c0_1, %c0_2] : memref<1x128xf32, #tpu.memory_space<vmem>>, vector<1x128xf32>
    %c0_3 = arith.constant 0 : index
    %c0_4 = arith.constant 0 : index
    %2 = vector.load %arg1[%c0_3, %c0_4] : memref<8x128xf32, #tpu.memory_space<vmem>>, vector<8x128xf32>
    %3 = vector.broadcast %0 : vector<1x128xf32> to vector<8x128xf32>
    %4 = arith.mulf %2, %3 : vector<8x128xf32>
    %5 = vector.broadcast %1 : vector<1x128xf32> to vector<8x128xf32>
    %6 = arith.addf %4, %5 : vector<8x128xf32>
    %c0_5 = arith.constant 0 : index
    %c0_6 = arith.constant 0 : index
    %7 = vector.load %arg4[%c0_5, %c0_6] : memref<8x128xf32, #tpu.memory_space<vmem>>, vector<8x128xf32>
    tpu.vector_store %arg4[%c0_5, %c0_6], %6 {strides = array<i32>} : memref<8x128xf32, #tpu.memory_space<vmem>>, vector<8x128xf32>,
    return
  }
  func.func @transform_0(%arg0: i32) -> (i32, i32) {
    %c0_i32 = arith.constant 0 : i32
    %c0_i32_0 = arith.constant 0 : i32
    return %arg0, %c0_i32 : i32, i32
  }
  func.func @transform_1(%arg0: i32) -> (i32, i32) {
    %c0_i32 = arith.constant 0 : i32
    %c0_i32_0 = arith.constant 0 : i32
    %c0_i32_1 = arith.constant 0 : i32
    return %c0_i32, %c0_i32_0 : i32, i32
  }
  func.func @transform_2(%arg0: i32) -> (i32, i32) {
    %c0_i32 = arith.constant 0 : i32
    %c0_i32_0 = arith.constant 0 : i32
    %c0_i32_1 = arith.constant 0 : i32
    return %c0_i32, %c0_i32_0 : i32, i32
  }
  func.func @transform_3(%arg0: i32) -> (i32, i32) {
    %c0_i32 = arith.constant 0 : i32
    %c0_i32_0 = arith.constant 0 : i32
    return %arg0, %c0_i32 : i32, i32
  }
}

</mosaic_0001>

<bundles_post_ra>
// kernel: tpu_custom_call.1
= control target key start
LH: loop header
LB: loop body
LE: loop exit
PB: predicated region body
PF: predicated region fallthrough
CT: control target
= control target key end

     0   :  { %8 = vsyncpa [#allocation3], 0  ;;  %s611_s0 = inlined_call_operand.hbm [shape: f32[16,128], index: 0, kind: input, shape index: {}]   ;;  %s612_s1 = inlined_call_operand.vmem [shape: f32[1,128], index: 1, kind: input, shape index: {}]   ;;  %s613_s2 = inlined_call_operand.vmem [shape: f32[1,128], index: 2, kind: input, shape index: {}]   ;;  %s614_s3 = inlined_call_operand.hbm [shape: f32[16,128], index: 3, kind: output, shape index: {}]  }
   0x1   :  { %10 = vsyncpa [#allocation3 + $0x1], 0 }
   0x2   :  { %11 = vsyncpa [#allocation4], 0 }
   0x3   :  { %13 = vsyncpa [#allocation4 + $0x1], 0  ;;  %s464_s12 = smov 0   ;;  %s466_s13 = smov 0  }
   0x4   :  { %s468_s14 = smov 0   ;;  %s470_s15 = smov 0  }
   0x5 LB: > { %s485_s16 = sadd.s32 4294967295, %s440_s15   ;;  %s288_s17 = sadd.s32 4294967294, %s440_s15   ;;  %s440_s15 = sphi %s470_s15, %s631_s15   ;;  %s436_s14 = sphi %s468_s14, %s630_s14   ;;  %s432_s13 = sphi %s466_s13, %s629_s13   ;;  %s428_s12 = sphi %s464_s12, %s628_s12  }
   0x6   : > { %s489_s18 = sadd.s32 1, %s440_s15   ;;  %s26_s19 = sadd.s32 1, %s436_s14 }
   0x7   : > { %s23_s20 = ssub.s32 %s440_s15, %s489_s18  ;;  %p33_p0 = scmp.ne.s32.totalorder %s436_s14, %s432_s13 }
   0x8   : > { %p24_p1 = scmp.eq.s32.totalorder %s23_s20, 0  ;;  %p34_p2 = scmp.eq.s32.totalorder %s440_s15, 0 }
   0x9   : > { %p39_p3 = scmp.ne.s32.totalorder %s432_s13, %s428_s12  ;;  %p40_p4 = scmp.eq.s32.totalorder %s485_s16, 0 }
   0xa   : > { %s501_s21 = scalar_select %p24_p1, %s436_s14, %s26_s19  }
   0xb   : > { %p503_p5 = por %p34_p2, %p33_p0  ;;  %p507_p6 = por %p40_p4, %p39_p3 }
   0xc   : > { %p105_p7 = scmp.eq.s32.totalorder %s485_s16, 1  ;;  %p111_p8 = scmp.eq.s32.totalorder %s288_s17, 1 }
   0xd   : > { %s618_s23 = scalar_select %p507_p6, 1, 0 }
   0xe   : > { %p314_p10 = scmp.lt.s32.totalorder %s440_s15, 2  ;;  %p514_p11 = por %p105_p7, %p33_p0 }
   0xf   : > { %p518_p12 = por %p111_p8, %p39_p3  ;;  %s137_s26 = sand.u32 1, %s436_s14  }
  0x10   : > { %s619_s24 = scalar_select %p514_p11, 1, 0 }
  0x11   : > { %s620_s25 = scalar_select %p518_p12, 1, 0 }
  0x12   : > { %s292_s27 = sshll.u32 %s440_s15, 7  ;;  %s291_s28 = sshll.u32 %s137_s26, 3 }
  0x13   : > { %s527_s4 = scalar_lea.hbm %s611_s0, %s292_s27  ;;  %s141_s5 = scalar_lea.vmem [#allocation2], %s291_s28 }
  0x14   : > { %s148_s6 = sshll.u32 %s141_s5, 4  ;;  %p531_p13 = pnand %p314_p10, %p503_p5  ;;  %s535_s6 = int_to_ptr.vmem [resolvable:$true] %s148_s6 }
  0x15   : > { %s138_s8 = scalar_lea.sflag [#allocation3], %s137_s26  ;;  %s348_s9 = scalar_lea.hbm %s527_s4, 128 }
  0x16   : > { %p349_p2 = scmp.ne.s32.totalorder %s527_s4, %s348_s9  ;;  %p350_p3 = pneg %p531_p13 }
  0x17   : > { %s353_s17 = scalar_lea.hbm %s611_s0, 256  ;;  %p354_p5 = scmp.lt.s32.totalorder %s527_s4, %s611_s0 }
  0x18   : > { %p351_p4 = pnand %p350_p3, %p349_p2  ;;  %p355_p8 = scmp.lt.s32.totalorder %s353_s17, %s348_s9 }
  0x1a   : > { %p352_p7 = pneg %p351_p4  ;;  %p356_p10 = por %p355_p8, %p354_p5 }
  0x1c   : > { %p357_p9 = pnand %p356_p10, %p352_p7 }
  0x1e   : > { %360 = shalt.err (!%p357_p9)
}
  0x1f   : > { %s361_s22 = scalar_lea.vmem %s535_s6, 128  ;;  %s442_s26 = smov [#allocation2]  }
  0x20   : > { %p362_p0 = scmp.ne.s32.totalorder %s535_s6, %s361_s22  ;;  %s366_s27 = sshll.u32 %s442_s26, 4  ;;  %s367_s27 = int_to_ptr.vmem [resolvable:$false] %s366_s27 }
  0x21   : > { %s368_s28 = scalar_lea.vmem %s367_s27, 256  ;;  %p369_p4 = scmp.lt.s32.totalorder %s535_s6, %s367_s27 }
  0x22   : > { %p364_p1 = pnand %p362_p0, %p350_p3  ;;  %p370_p12 = scmp.lt.s32.totalorder %s368_s28, %s361_s22 }
  0x24   : > { %p365_p2 = pneg %p364_p1  ;;  %p371_p11 = por %p370_p12, %p369_p4 }
  0x26   : > { %p372_p6 = pnand %p371_p11, %p365_p2 }
  0x28   : > { %375 = shalt.err (!%p372_p6)
}
  0x29   : > { %309 = dma.hbm_to_vmem [thread:$0]  (!%p531_p13), %s527_s4, 128, %s535_s6, %s138_s8  }
  0x2a   : > { %p622_p9 = scmp.lt.s32.totalorder %s440_s15, 3  ;;  %p623_p7 = scmp.ge.s32.totalorder %s440_s15, 1 }
  0x2c   : > { %p154_p0 = pnand %p623_p7, %p622_p9 }
  0x2d   : > { %s562_s29 = sand.u32 (!%p154_p0), 1, %s432_s13   ;;  %p624_p6 = scmp.ne.s32.totalorder (!%p154_p0), %s618_s23, 0 }
  0x2e   : > { %157 = sbr.rel (%p154_p0) target bundleno = 77 (0x4d), region = 32  ;;  %s294_s30 = sshll.u32 (!%p154_p0), %s562_s29, 3 }
  0x2f   : > { %s160_s5 = scalar_lea.sflag (!%p154_p0), [#allocation3], %s562_s29  ;;  %s163_s9 = scalar_lea.vmem (!%p154_p0), [#allocation2], %s294_s30 }
  0x33   : > { %419 = dma.done.wait (%p624_p6), %s160_s5, 128  }
  0x34   : > { %421 = vsyncadd (%p624_p6), %s160_s5, 4294967168  ;;  %s185_s4 = scalar_lea.vmem [#allocation5], %s294_s30  ;;  %v296_v0 = vld [vmem:[%s612_s1] ss:$0 sm:$0xff]  ;;  %s299_s17 = sshll.u32 %s485_s16, 7 }
  0x35   : > { %s218_s6 = sshll.u32 %s185_s4, 4  ;;  %v297_v1 = vld [vmem:[%s613_s2] ss:$0 sm:$0xff]  ;;  %s216_s20 = scalar_lea.hbm %s614_s3, %s299_s17  ;;  %s219_s6 = int_to_ptr.vmem [resolvable:$true] %s218_s6 }
  0x36   : > { %v188_v2 = vld [vmem:[%s163_s9] sm:$0xff]  ;;  %s205_s22 = scalar_lea.sflag [#allocation4], %s562_s29  ;;  %s376_s26 = scalar_lea.vmem %s219_s6, 128 }
  0x37   : > { %v195_v3 = vmul.f32 %v296_v0, %v188_v2  ;;  %p377_p11 = scmp.ne.s32.totalorder %s219_s6, %s376_s26  ;;  %p625_p12 = scmp.ne.s32.totalorder %s619_s24, 0 }
  0x38   : > { %s443_s27 = smov [#allocation5]  }
  0x39   : > { %v202_v4 = vadd.f32 %v297_v1, %v195_v3  ;;  %p378_p13 = pnand %p377_p11, %p625_p12  ;;  %s380_s28 = sshll.u32 %s443_s27, 4  ;;  %s381_s28 = int_to_ptr.vmem [resolvable:$false] %s380_s28 }
  0x3a   : > { %s382_s30 = scalar_lea.vmem %s381_s28, 256  ;;  %p383_p3 = scmp.lt.s32.totalorder %s219_s6, %s381_s28 }
  0x3b   : > { %203 = vst [vmem:[%s185_s4] sm:$0xff] %v202_v4  ;;  %p379_p1 = pneg %p378_p13  ;;  %p384_p5 = scmp.lt.s32.totalorder %s382_s30, %s376_s26 }
  0x3d   : > { %p385_p8 = por %p384_p5, %p383_p3 }
  0x3f   : > { %p386_p10 = pnand %p385_p8, %p379_p1 }
  0x41   : > { %389 = shalt.err (!%p386_p10)
}
  0x42   : > { %s390_s16 = scalar_lea.hbm %s216_s20, 128  ;;  %s394_s9 = scalar_lea.hbm %s614_s3, 256 }
  0x43   : > { %p391_p2 = scmp.ne.s32.totalorder %s216_s20, %s390_s16  ;;  %p395_p7 = scmp.lt.s32.totalorder %s216_s20, %s614_s3 }
  0x44   : > { %p396_p0 = scmp.lt.s32.totalorder %s394_s9, %s390_s16 }
  0x45   : > { %p392_p4 = pnand %p391_p2, %p625_p12 }
  0x46   : > { %p397_p6 = por %p396_p0, %p395_p7 }
  0x47   : > { %p393_p9 = pneg %p392_p4 }
  0x49   : > { %p398_p11 = pnand %p397_p6, %p393_p9 }
  0x4b   : > { %401 = shalt.err (!%p398_p11)
}
  0x4c   : > { %304 = dma.vmem_to_hbm [thread:$0]  (%p625_p12), %s219_s6, 128, %s216_s20, %s205_s22  }
  0x4d PF: > { %s230_s8 = sand.u32 1, %s428_s12   ;;  %p626_p13 = scmp.ne.s32.totalorder %s620_s25, 0 }
  0x4e   : > { %p627_p1 = scmp.ge.s32.totalorder %s440_s15, 2  ;;  %s231_s10 = scalar_lea.sflag [#allocation4], %s230_s8 }
  0x50   : > { %p311_p3 = pnand %p627_p1, %p626_p13 }
  0x52   : > { %p312_p5 = pneg %p311_p3 }
  0x54   : > { %423 = dma.done.wait (%p312_p5), %s231_s10, 128  }
  0x55   : > { %425 = vsyncadd (%p312_p5), %s231_s10, 4294967168  ;;  %p16_p8 = scmp.ge.s32.totalorder %s489_s18, 4   ;;  %s628_s12 = smov %s432_s13 }
  0x56   : > { %s629_s13 = smov %s436_s14  ;;  %s630_s14 = smov %s501_s21 }
  0x57   : > { %s631_s15 = smov %s489_s18  ;;  %18 = sbr.rel (!%p16_p8) target bundleno = 5 (0x5), region = 77 }
  0x5c   :  { %236 = vsyncpa [#allocation3], 1 }
  0x5d   :  { %238 = vsyncpa [#allocation3 + $0x1], 1 }
  0x5e   :  { %239 = vsyncpa [#allocation4], 1 }
  0x5f   :  { %241 = vsyncpa [#allocation4 + $0x1], 1 }

</bundles_post_ra>
